<compile_context>
chip_gen: v6e
topology: v6e:2x2x1
jax: 0.10.0
libtpu: 0.0.40
codegen_flags: <defaults>
</compile_context>

<pallas_src>
import jax
import jax.numpy as jnp
from jax import lax
from jax.experimental import pallas as pl
from jax.experimental.pallas import tpu as pltpu

STATE_SPACE = 2     # MountainCar-v0 observation dim
ACTION_SPACE = 3    # MountainCar-v0 action dim
HIDDEN = 128
ACTION_PAD = 8      # pad actions to one full sublane group


def _round_up(n, m):
    return ((n + m - 1) // m) * m


def dqn_kernel(xt_ref, w1t_ref, b1t_ref, w2t_ref, b2t_ref, o_ref):
    # xt_ref:  (S, TB)        transposed input block (batch in lanes)
    # w1t_ref: (H, S)         first-layer weights, transposed
    # b1t_ref: (H, 1)
    # w2t_ref: (AP, H)        second-layer weights, transposed + sublane-padded
    # b2t_ref: (AP, 1)        padded rows carry -1e9
    # o_ref:   (AP, TB)       softmax probabilities (rows 0..A-1 valid)
    xt = xt_ref[...]

    # Linear(2 -> 128) as S=2 VPU FMAs (outer products) in batch-in-lanes
    # orientation: h has shape (H, TB).  Avoids a K=2 MXU contraction.
    h = b1t_ref[...]
    for s in range(xt_ref.shape[0]):
        h = h + w1t_ref[:, s:s + 1] * xt[s:s + 1, :]

    # Dropout(p=0.6): identity in eval mode.
    # ReLU
    h = jnp.maximum(h, 0.0)

    # Linear(128 -> 3), padded to 8 sublane-dense output rows: (AP,H)@(H,TB).
    # HIGHEST precision keeps the f32 contraction exact (matches reference).
    logits = jnp.dot(w2t_ref[...], h,
                     preferred_element_type=jnp.float32,
                     precision=lax.Precision.HIGHEST) + b2t_ref[...]

    # Numerically stable softmax along the (8-sublane) action axis.
    # Padded rows: zero weights + (-1e9) bias => exp underflows to 0.
    m = jnp.max(logits, axis=0, keepdims=True)
    e = jnp.exp(logits - m)
    denom = jnp.sum(e, axis=0, keepdims=True)
    o_ref[...] = e / denom


def dqn_forward(x, w1, b1, w2, b2, *, batch_block=2048):
    B, S = x.shape
    H = w1.shape[1]
    A = w2.shape[1]
    AP = ACTION_PAD

    # Batch lives in the lane axis, so batch tiles are multiples of 128 lanes.
    # Large tiles amortize per-grid-step overhead; batches larger than
    # batch_block produce >=2 "parallel" steps that shard across TCs (v7x).
    TB = _round_up(min(batch_block, max(B, 1)), 128)
    Bp = _round_up(B, TB)

    # Transpose + pad the input to (S, Bp); padded batch columns are sliced
    # off at the end (they just compute a bias-only softmax).
    xt = jnp.pad(x.T, ((0, 0), (0, Bp - B)))
    w1t = w1.T                                   # (H, S)
    b1t = b1.reshape(H, 1)                       # (H, 1)
    # Pad tiny (H, A) projection to a full (AP, H) sublane group, transposed.
    w2t_pad = jnp.zeros((AP, H), jnp.float32).at[:A, :].set(w2.T)
    b2t_pad = jnp.full((AP, 1), -1e9, jnp.float32).at[:A, 0].set(b2)

    out = pl.pallas_call(
        dqn_kernel,
        out_shape=jax.ShapeDtypeStruct((AP, Bp), jnp.float32),
        grid=(Bp // TB,),
        in_specs=[
            pl.BlockSpec((S, TB), lambda i: (0, i)),
            pl.BlockSpec((H, S), lambda i: (0, 0)),
            pl.BlockSpec((H, 1), lambda i: (0, 0)),
            pl.BlockSpec((AP, H), lambda i: (0, 0)),
            pl.BlockSpec((AP, 1), lambda i: (0, 0)),
        ],
        out_specs=pl.BlockSpec((AP, TB), lambda i: (0, i)),
        compiler_params=pltpu.CompilerParams(
            dimension_semantics=("parallel",)),
    )(xt, w1t, b1t, w2t_pad, b2t_pad)

    # The (AP, Bp) result is tiny; the slice+transpose back to (B, A) is cheap.
    # A fused consumer (e.g. in-kernel argmax for action selection) could skip it.
    return out[:A, :B].T


def init_params(key):
    """Deterministic init mimicking PyTorch nn.Linear default (uniform +-1/sqrt(fan_in))."""
    k1, k2, k3, k4 = jax.random.split(key, 4)
    bound1 = 1.0 / jnp.sqrt(jnp.float32(STATE_SPACE))
    bound2 = 1.0 / jnp.sqrt(jnp.float32(HIDDEN))
    w1 = jax.random.uniform(k1, (STATE_SPACE, HIDDEN), jnp.float32, -bound1, bound1)
    b1 = jax.random.uniform(k2, (HIDDEN,), jnp.float32, -bound1, bound1)
    w2 = jax.random.uniform(k3, (HIDDEN, ACTION_SPACE), jnp.float32, -bound2, bound2)
    b2 = jax.random.uniform(k4, (ACTION_SPACE,), jnp.float32, -bound2, bound2)
    return w1, b1, w2, b2


def dqn_reference(x, w1, b1, w2, b2):
    # High-precision f32 reference (no bf16 MXU truncation), matching the
    # precision used inside the kernel.
    h = jnp.dot(x, w1, precision=lax.Precision.HIGHEST) + b1
    h = jnp.maximum(h, 0.0)
    logits = jnp.dot(h, w2, precision=lax.Precision.HIGHEST) + b2
    return jax.nn.softmax(logits, axis=-1)


if __name__ == "__main__":
    key = jax.random.PRNGKey(0)
    kx, kp = jax.random.split(key)
    w1, b1, w2, b2 = init_params(kp)

    # Main test: small batch (pads to one 128-lane tile, single grid step).
    B = 64
    x = jax.random.normal(kx, (B, STATE_SPACE), jnp.float32)
    out = jax.block_until_ready(dqn_forward(x, w1, b1, w2, b2))
    ref = dqn_reference(x, w1, b1, w2, b2)
    assert out.shape == (B, ACTION_SPACE)
    assert jnp.allclose(out, ref, atol=2e-3, rtol=2e-3), "mismatch vs reference"
    assert jnp.allclose(jnp.sum(out, axis=-1), 1.0, atol=1e-3), "softmax rows must sum to 1"

    # Ragged-batch test: exercises the lane-padding path.
    B2 = 5
    x2 = jax.random.normal(jax.random.PRNGKey(1), (B2, STATE_SPACE), jnp.float32)
    out2 = jax.block_until_ready(dqn_forward(x2, w1, b1, w2, b2))
    ref2 = dqn_reference(x2, w1, b1, w2, b2)
    assert out2.shape == (B2, ACTION_SPACE)
    assert jnp.allclose(out2, ref2, atol=2e-3, rtol=2e-3), "mismatch vs reference (ragged B)"

    print("KERNEL_OK")
</pallas_src>

<mosaic_0001>
module attributes {stable_mosaic.version = 11 : i64} {
  func.func @dqn_kernel(%arg0: i32, %arg1: memref<2x128xf32, #tpu.memory_space<vmem>>, %arg2: memref<128x2xf32, #tpu.memory_space<vmem>>, %arg3: memref<128x1xf32, #tpu.memory_space<vmem>>, %arg4: memref<8x128xf32, #tpu.memory_space<vmem>>, %arg5: memref<8x1xf32, #tpu.memory_space<vmem>>, %arg6: memref<8x128xf32, #tpu.memory_space<vmem>>) attributes {dimension_semantics = [#tpu.dimension_semantics<parallel>], iteration_bounds = array<i64: 1>, scalar_prefetch = 0 : i64, scratch_operands = 0 : i64, tpu.core_type = #tpu.core_type<tc>, window_params = [{transform_indices = @transform_0, window_bounds = array<i64: 2, 128>}, {pipeline_mode = #tpu.pipeline_mode<synchronous>, transform_indices = @transform_1, window_bounds = array<i64: 128, 2>}, {pipeline_mode = #tpu.pipeline_mode<synchronous>, transform_indices = @transform_2, window_bounds = array<i64: 128, 1>}, {pipeline_mode = #tpu.pipeline_mode<synchronous>, transform_indices = @transform_3, window_bounds = array<i64: 8, 128>}, {pipeline_mode = #tpu.pipeline_mode<synchronous>, transform_indices = @transform_4, window_bounds = array<i64: 8, 1>}, {transform_indices = @transform_5, window_bounds = array<i64: 8, 128>}]} {
    %c0 = arith.constant 0 : index
    %c0_0 = arith.constant 0 : index
    %0 = vector.load %arg1[%c0, %c0_0] : memref<2x128xf32, #tpu.memory_space<vmem>>, vector<2x128xf32>
    %c0_1 = arith.constant 0 : index
    %c0_2 = arith.constant 0 : index
    %1 = vector.load %arg3[%c0_1, %c0_2] : memref<128x1xf32, #tpu.memory_space<vmem>>, vector<128x1xf32>
    %c0_3 = arith.constant 0 : index
    %c0_4 = arith.constant 0 : index
    %2 = vector.load %arg2[%c0_3, %c0_4] : memref<128x2xf32, #tpu.memory_space<vmem>>, vector<128x1xf32>
    %3 = vector.extract_strided_slice %0 {offsets = [0, 0], sizes = [1, 128], strides = [1, 1]} : vector<2x128xf32> to vector<1x128xf32>
    %4 = vector.broadcast %2 : vector<128x1xf32> to vector<128x128xf32>
    %5 = vector.broadcast %3 : vector<1x128xf32> to vector<128x128xf32>
    %6 = arith.mulf %4, %5 : vector<128x128xf32>
    %7 = vector.broadcast %1 : vector<128x1xf32> to vector<128x128xf32>
    %8 = arith.addf %7, %6 : vector<128x128xf32>
    %c0_5 = arith.constant 0 : index
    %c1 = arith.constant 1 : index
    %9 = vector.load %arg2[%c0_5, %c1] : memref<128x2xf32, #tpu.memory_space<vmem>>, vector<128x1xf32>
    %10 = vector.extract_strided_slice %0 {offsets = [1, 0], sizes = [1, 128], strides = [1, 1]} : vector<2x128xf32> to vector<1x128xf32>
    %11 = vector.broadcast %9 : vector<128x1xf32> to vector<128x128xf32>
    %12 = vector.broadcast %10 : vector<1x128xf32> to vector<128x128xf32>
    %13 = arith.mulf %11, %12 : vector<128x128xf32>
    %14 = arith.addf %8, %13 : vector<128x128xf32>
    %cst = arith.constant 0.000000e+00 : f32
    %15 = vector.broadcast %cst : f32 to vector<128x128xf32>
    %16 = arith.maximumf %14, %15 : vector<128x128xf32>
    %c0_6 = arith.constant 0 : index
    %c0_7 = arith.constant 0 : index
    %17 = vector.load %arg4[%c0_6, %c0_7] : memref<8x128xf32, #tpu.memory_space<vmem>>, vector<8x128xf32>
    %cst_8 = arith.constant dense<0.000000e+00> : vector<8x128xf32>
    %18 = tpu.matmul %17, %16, %cst_8 {dimension_numbers = #tpu.dot_dimension_numbers<[1], [0], [0], [1], [0, 0, 1, 1], [], []>, precision = #tpu.contract_precision<fp32>} : vector<8x128xf32>, vector<128x128xf32>, vector<8x128xf32> -> vector<8x128xf32>
    %c0_9 = arith.constant 0 : index
    %c0_10 = arith.constant 0 : index
    %19 = vector.load %arg5[%c0_9, %c0_10] : memref<8x1xf32, #tpu.memory_space<vmem>>, vector<8x1xf32>
    %20 = vector.broadcast %19 : vector<8x1xf32> to vector<8x128xf32>
    %21 = arith.addf %18, %20 : vector<8x128xf32>
    %cst_11 = arith.constant dense<0xFF800000> : vector<128xf32>
    %22 = vector.multi_reduction <maximumf>, %21, %cst_11 [0] : vector<8x128xf32> to vector<128xf32>
    %23 = vector.shape_cast %22 : vector<128xf32> to vector<1x128xf32>
    %24 = vector.broadcast %23 : vector<1x128xf32> to vector<8x128xf32>
    %25 = arith.subf %21, %24 : vector<8x128xf32>
    %26 = math.exp %25 : vector<8x128xf32>
    %cst_12 = arith.constant dense<0.000000e+00> : vector<128xf32>
    %27 = vector.multi_reduction <add>, %26, %cst_12 [0] : vector<8x128xf32> to vector<128xf32>
    %28 = vector.shape_cast %27 : vector<128xf32> to vector<1x128xf32>
    %29 = vector.broadcast %28 : vector<1x128xf32> to vector<8x128xf32>
    %30 = arith.divf %26, %29 : vector<8x128xf32>
    %c0_13 = arith.constant 0 : index
    %c0_14 = arith.constant 0 : index
    %31 = vector.load %arg6[%c0_13, %c0_14] : memref<8x128xf32, #tpu.memory_space<vmem>>, vector<8x128xf32>
    tpu.vector_store %arg6[%c0_13, %c0_14], %30 {strides = array<i32>} : memref<8x128xf32, #tpu.memory_space<vmem>>, vector<8x128xf32>,
    return
  }
  func.func @transform_0(%arg0: i32) -> (i32, i32) {
    %c0_i32 = arith.constant 0 : i32
    %c0_i32_0 = arith.constant 0 : i32
    return %c0_i32, %arg0 : i32, i32
  }
  func.func @transform_1(%arg0: i32) -> (i32, i32) {
    %c0_i32 = arith.constant 0 : i32
    %c0_i32_0 = arith.constant 0 : i32
    %c0_i32_1 = arith.constant 0 : i32
    return %c0_i32, %c0_i32_0 : i32, i32
  }
  func.func @transform_2(%arg0: i32) -> (i32, i32) {
    %c0_i32 = arith.constant 0 : i32
    %c0_i32_0 = arith.constant 0 : i32
    %c0_i32_1 = arith.constant 0 : i32
    return %c0_i32, %c0_i32_0 : i32, i32
  }
  func.func @transform_3(%arg0: i32) -> (i32, i32) {
    %c0_i32 = arith.constant 0 : i32
    %c0_i32_0 = arith.constant 0 : i32
    %c0_i32_1 = arith.constant 0 : i32
    return %c0_i32, %c0_i32_0 : i32, i32
  }
  func.func @transform_4(%arg0: i32) -> (i32, i32) {
    %c0_i32 = arith.constant 0 : i32
    %c0_i32_0 = arith.constant 0 : i32
    %c0_i32_1 = arith.constant 0 : i32
    return %c0_i32, %c0_i32_0 : i32, i32
  }
  func.func @transform_5(%arg0: i32) -> (i32, i32) {
    %c0_i32 = arith.constant 0 : i32
    %c0_i32_0 = arith.constant 0 : i32
    return %c0_i32, %arg0 : i32, i32
  }
}

</mosaic_0001>

<bundles_post_ra>
// kernel: tpu_custom_call.1
= control target key start
LH: loop header
LB: loop body
LE: loop exit
PB: predicated region body
PF: predicated region fallthrough
CT: control target
= control target key end

     0   :  { %v1407_v2 = vmov 0   ;;  %v1408_v4 = vmov 1   ;;  %v1409_v7 = vmov 0.0   ;;  %s1982_s0 = inlined_call_operand.vmem [shape: f32[2,128], index: 0, kind: input, shape index: {}]   ;;  %s1983_s1 = inlined_call_operand.vmem [shape: f32[128,2], index: 1, kind: input, shape index: {}]   ;;  %s1984_s2 = inlined_call_operand.vmem [shape: f32[128,1], index: 2, kind: input, shape index: {}]   ;;  %s1985_s3 = inlined_call_operand.vmem [shape: f32[8,128], index: 3, kind: input, shape index: {}]   ;;  %s1986_s4 = inlined_call_operand.vmem [shape: f32[8,1], index: 4, kind: input, shape index: {}]   ;;  %s1987_s5 = inlined_call_operand.hbm [shape: f32[8,128], index: 5, kind: output, shape index: {}]  }
   0x1   :  { %v53_v0 = vld [vmem:[%s1983_s1 + $0x78] sm:$0xff]  ;;  %1364 = vset.pattern.permute.xlu1 %v1407_v2  ;;  %1363 = vset.pattern.permute.xlu0 %v1407_v2  ;;  %v52_v3 = vld [vmem:[%s1983_s1 + $0x70] sm:$0xff]  ;;  %v51_v5 = vld [vmem:[%s1983_s1 + $0x68] sm:$0xff] }
   0x2   :  { %v37_v1 = vld [vmem:[%s1984_s2 + $0x78] sm:$0xff]  ;;  %131 = vperm.xlu0 %1363, %v53_v0   ;;  %v36_v6 = vld [vmem:[%s1984_s2 + $0x70] sm:$0xff]  ;;  %1148 = vmatprep.subr.mxu0 %v1409_v7  ;;  %v34_v8 = vld [vmem:[%s1984_s2 + $0x60] sm:$0xff] }
   0x3   :  { %231 = vperm.xlu1 %1364, %v37_v1   ;;  %1183 = vmatprep.subr.mxu1 %v1409_v7 }
   0x6   :  { %126 = vperm.xlu0 %1363, %v52_v3  }
   0x7   :  { %1365 = vset.pattern.permute.xlu1 %v1408_v4 }
   0x8   :  { %311 = vperm.xlu1 %1365, %v53_v0  }
   0xa   :  { %121 = vperm.xlu0 %1363, %v51_v5  }
   0xc   :  { %1366 = vset.pattern.permute.xlu1 %v1407_v2 }
   0xd   :  { %10 = vsyncpa [#allocation3], 0  ;;  %226 = vperm.xlu1 %1366, %v36_v6   ;;  %v50_v9 = vld [vmem:[%s1983_s1 + $0x60] sm:$0xff]  ;;  %v33_v10 = vld [vmem:[%s1984_s2 + $0x58] sm:$0xff]  ;;  %v134_v33 = vlaneseq  ;;  %vm1410_vm0 = vmmov 0  }
   0xe   :  { %216 = vperm.xlu0 %1363, %v34_v8   ;;  %v35_v11 = vld [vmem:[%s1984_s2 + $0x68] sm:$0xff]  ;;  %v49_v13 = vld [vmem:[%s1983_s1 + $0x58] sm:$0xff]  ;;  %v30_v14 = vld [vmem:[%s1984_s2 + $0x40] sm:$0xff]  ;;  %1180 = vmatprep.mubr.msk.f32.mxu0 %vm1410_vm0, %v1409_v7 }
   0xf   :  { %v47_v12 = vld [vmem:[%s1983_s1 + $0x48] sm:$0xff]  ;;  %v29_v15 = vld [vmem:[%s1984_s2 + $0x38] sm:$0xff]  ;;  %v48_v16 = vld [vmem:[%s1983_s1 + $0x50] sm:$0xff]  ;;  %v135_v35 = vshrl.u32 %v134_v33, 7  ;;  %1215 = vmatprep.mubr.msk.f32.mxu1 %vm1410_vm0, %v1409_v7 }
  0x10   :  { %v43_v17 = vld [vmem:[%s1983_s1 + $0x28] sm:$0xff]  ;;  %v26_v18 = vld [vmem:[%s1984_s2 + $0x20] sm:$0xff]  ;;  %v25_v19 = vld [vmem:[%s1984_s2 + $0x18] sm:$0xff] }
  0x11   :  { %116 = vperm.xlu1 %1366, %v50_v9   ;;  %v32_v20 = vld [vmem:[%s1984_s2 + $0x50] sm:$0xff]  ;;  %v39_v21 = vld [vmem:[%s1983_s1 + $0x8] sm:$0xff]  ;;  %v46_v22 = vld [vmem:[%s1983_s1 + $0x40] sm:$0xff]  ;;  %v136_v37 = vsub.s32 0, %v135_v35  ;;  %v316_v41 = vsub.s32 1, %v135_v35 }
  0x12   :  { %211 = vperm.xlu0 %1363, %v33_v10   ;;  %v31_v23 = vld [vmem:[%s1984_s2 + $0x48] sm:$0xff]  ;;  %v45_v24 = vld [vmem:[%s1983_s1 + $0x38] sm:$0xff]  ;;  %v44_v25 = vld [vmem:[%s1983_s1 + $0x30] sm:$0xff] }
  0x13   :  { %v40_v26 = vld [vmem:[%s1983_s1 + $0x10] sm:$0xff]  ;;  %v42_v28 = vld [vmem:[%s1983_s1 + $0x20] sm:$0xff]  ;;  %v27_v30 = vld [vmem:[%s1984_s2 + $0x28] sm:$0xff] }
  0x14   :  { %v28_v27 = vld [vmem:[%s1984_s2 + $0x30] sm:$0xff]  ;;  %v38_v29 = vld [vmem:[%s1983_s1] sm:$0xff]  ;;  %v41_v31 = vld [vmem:[%s1983_s1 + $0x18] sm:$0xff] }
  0x15   :  { %221 = vperm.xlu1 %1366, %v35_v11   ;;  %v24_v32 = vld [vmem:[%s1984_s2 + $0x10] sm:$0xff]  ;;  %v23_v34 = vld [vmem:[%s1984_s2 + $0x8] sm:$0xff]  ;;  %v22_v36 = vld [vmem:[%s1984_s2] sm:$0xff] }
  0x16   :  { %101 = vperm.xlu0 %1363, %v47_v12   ;;  %v21_v38 = vld [vmem:[%s1982_s0] sm:$0x3] }
  0x17   :  { %v367_v39 = vld [vmem:[%s1986_s4] sm:$0xff]  ;;  %v1564_v40 = vrot.slane %v21_v38, %v136_v37  ;;  %v1571_v45 = vrot.slane %v21_v38, %v316_v41 }
  0x19   :  { %111 = vperm.xlu1 %1366, %v49_v13  }
  0x1a   :  { %196 = vperm.xlu0 %1363, %v30_v14  }
  0x1d   :  { %1367 = vset.pattern.permute.xlu1 %v1408_v4 }
  0x1e   :  { %299 = vperm.xlu1 %1367, %v50_v9   ;;  %191 = vperm.xlu0 %1363, %v29_v15  }
  0x22   :  { %1368 = vset.pattern.permute.xlu1 %v1407_v2  ;;  %81 = vperm.xlu0 %1363, %v43_v17  }
  0x23   :  { %106 = vperm.xlu1 %1368, %v48_v16  }
  0x26   :  { %176 = vperm.xlu0 %1363, %v26_v18  }
  0x27   :  { %1369 = vset.pattern.permute.xlu1 %v1408_v4 }
  0x28   :  { %295 = vperm.xlu1 %1369, %v49_v13  }
  0x2a   :  { %171 = vperm.xlu0 %1363, %v25_v19  }
  0x2c   :  { %1370 = vset.pattern.permute.xlu1 %v1407_v2 }
  0x2d   :  { %206 = vperm.xlu1 %1370, %v32_v20  }
  0x2e   :  { %61 = vperm.xlu0 %1363, %v39_v21  }
  0x31   :  { %96 = vperm.xlu1 %1370, %v46_v22  }
  0x32   :  { %1378 = vset.pattern.permute.xlu0 %v1408_v4 }
  0x33   :  { %307 = vperm.xlu0 %1378, %v52_v3  }
  0x35   :  { %201 = vperm.xlu1 %1370, %v31_v23  }
  0x37   :  { %303 = vperm.xlu0 %1378, %v51_v5  }
  0x39   :  { %91 = vperm.xlu1 %1370, %v45_v24  }
  0x3b   :  { %291 = vperm.xlu0 %1378, %v48_v16  }
  0x3d   :  { %1371 = vset.pattern.permute.xlu1 %v1408_v4 }
  0x3e   :  { %283 = vperm.xlu1 %1371, %v46_v22  }
  0x3f   :  { %287 = vperm.xlu0 %1378, %v47_v12  }
  0x42   :  { %1372 = vset.pattern.permute.xlu1 %v1407_v2 }
  0x43   :  { %86 = vperm.xlu1 %1372, %v44_v25   ;;  %275 = vperm.xlu0 %1378, %v44_v25  }
  0x47   :  { %1373 = vset.pattern.permute.xlu1 %v1408_v4  ;;  %271 = vperm.xlu0 %1378, %v43_v17  }
  0x48   :  { %279 = vperm.xlu1 %1373, %v45_v24  }
  0x4b   :  { %259 = vperm.xlu0 %1378, %v40_v26  }
  0x4c   :  { %1374 = vset.pattern.permute.xlu1 %v1407_v2 }
  0x4d   :  { %186 = vperm.xlu1 %1374, %v28_v27  }
  0x4f   :  { %255 = vperm.xlu0 %1378, %v39_v21  }
  0x51   :  { %76 = vperm.xlu1 %1374, %v42_v28  }
  0x53   :  { %251 = vperm.xlu0 %1378, %v38_v29  }
  0x55   :  { %181 = vperm.xlu1 %1374, %v27_v30  }
  0x57   :  { %1380 = vset.pattern.permute.xlu0 %v1407_v2 }
  0x59   :  { %71 = vperm.xlu1 %1374, %v41_v31  }
  0x5d   :  { %1375 = vset.pattern.permute.xlu1 %v1408_v4 }
  0x5e   :  { %267 = vperm.xlu1 %1375, %v42_v28  }
  0x62   :  { %1376 = vset.pattern.permute.xlu1 %v1407_v2 }
  0x63   :  { %66 = vperm.xlu1 %1376, %v40_v26  }
  0x67   :  { %1377 = vset.pattern.permute.xlu1 %v1408_v4 }
  0x68   :  { %263 = vperm.xlu1 %1377, %v41_v31  }
  0x6c   :  { %1379 = vset.pattern.permute.xlu1 %v1407_v2 }
  0x6d   :  { %166 = vperm.xlu1 %1379, %v24_v32  }
  0x71   :  { %56 = vperm.xlu1 %1379, %v38_v29  }
  0x75   :  { %161 = vperm.xlu1 %1379, %v23_v34  }
  0x79   :  { %156 = vperm.xlu1 %1379, %v22_v36  }
  0x7d   :  { %370 = vperm.xlu1 %1379, %v367_v39   ;;  %v132_v42 = vpop.permute.xlu0 %131 }
  0x7e   :  { %v232_v43 = vpop.permute.xlu1 %231  ;;  %v153_v44 = vmul.f32 %v1564_v40, %v132_v42 }
  0x80   :  { %v249_v48 = vadd.f32 %v232_v43, %v153_v44 }
  0x81   :  { %v127_v46 = vpop.permute.xlu0 %126 }
  0x82   :  { %v152_v17 = vmul.f32 %v1564_v40, %v127_v46 }
  0x83   :  { %v312_v47 = vpop.permute.xlu1 %311 }
  0x84   :  { %v333_v49 = vmul.f32 %v1571_v45, %v312_v47 }
  0x85   :  { %v122_v51 = vpop.permute.xlu0 %121 }
  0x86   :  { %v349_v50 = vadd.f32 %v333_v49, %v249_v48  ;;  %v151_v23 = vmul.f32 %v1564_v40, %v122_v51 }
  0x88   :  { %v365_v52 = vmax.f32 %v349_v50, 0.0  ;;  %v227_v53 = vpop.permute.xlu1 %226 }
  0x89   :  { %v217_v55 = vpop.permute.xlu0 %216  ;;  %v248_v24 = vadd.f32 %v227_v53, %v152_v17 }
  0x8a   :  { %v1574_v54 = vand.u32 4294901760, %v365_v52 }
  0x8c   :  { %v1577_v56 = vsub.f32 %v365_v52, %v1574_v54  ;;  %v117_v57 = vpop.permute.xlu1 %116  ;;  %1149 = vmatpush3.msra.mxu0 %v1574_v54 }
  0x8d   :  { %1150 = vmatprep.subr.mxu0 %v1409_v7  ;;  %v212_v58 = vpop.permute.xlu0 %211  ;;  %v150_v10 = vmul.f32 %v1564_v40, %v117_v57 }
  0x8e   :  { %v467_v59 = vand.u32 4294901760, %v1577_v56 }
  0x8f   :  { %v246_v15 = vadd.f32 %v217_v55, %v150_v10 }
  0x90   :  { %v222_v60 = vpop.permute.xlu1 %221  ;;  %v468_v61 = vsub.f32 %v1577_v56, %v467_v59 }
  0x91   :  { %v102_v62 = vpop.permute.xlu0 %101  ;;  %v247_v31 = vadd.f32 %v222_v60, %v151_v23 }
  0x92   :  { %v469_v63 = vand.u32 4294901760, %v468_v61  ;;  %v147_v48 = vmul.f32 %v1564_v40, %v102_v62 }
  0x94   :  { %v112_v0 = vpop.permute.xlu1 %111  ;;  %1184 = vmatpush3.msra.mxu1 %v469_v63 }
  0x95   :  { %1185 = vmatprep.subr.mxu1 %v1409_v7  ;;  %v197_v1 = vpop.permute.xlu0 %196  ;;  %v149_v12 = vmul.f32 %v1564_v40, %v112_v0 }
  0x97   :  { %v245_v19 = vadd.f32 %v212_v58, %v149_v12 }
  0x99   :  { %v300_v2 = vpop.permute.xlu1 %299  ;;  %v1586_v3 = vpop.permute.xlu0 %191 }
  0x9a   :  { %v330_v13 = vmul.f32 %v1571_v45, %v300_v2 }
  0x9c   :  { %v346_v20 = vadd.f32 %v330_v13, %v246_v15 }
  0x9d   :  { %v1588_v5 = vpop.permute.xlu0 %81 }
  0x9e   :  { %v107_v4 = vpop.permute.xlu1 %106  ;;  %v362_v27 = vmax.f32 %v346_v20, 0.0 }
  0x9f   :  { %v148_v37 = vmul.f32 %v1564_v40, %v107_v4 }
  0xa0   :  { %v1604_v35 = vand.u32 4294901760, %v362_v27 }
  0xa1   :  { %v1590_v6 = vpop.permute.xlu0 %176 }
  0xa2   :  { %v1619_v49 = vsub.f32 %v362_v27, %v1604_v35 }
  0xa3   :  { %v296_v8 = vpop.permute.xlu1 %295 }
  0xa4   :  { %v329_v16 = vmul.f32 %v1571_v45, %v296_v8  ;;  %v488_v4 = vand.u32 4294901760, %v1619_v49 }
  0xa5   :  { %v1592_v9 = vpop.permute.xlu0 %171 }
  0xa6   :  { %v345_v21 = vadd.f32 %v329_v16, %v245_v19 }
  0xa8   :  { %v207_v11 = vpop.permute.xlu1 %206  ;;  %v361_v29 = vmax.f32 %v345_v21, 0.0 }
  0xa9   :  { %v1597_v14 = vpop.permute.xlu0 %61  ;;  %v244_v43 = vadd.f32 %v207_v11, %v148_v37 }
  0xaa   :  { %v1610_v41 = vand.u32 4294901760, %v361_v29 }
  0xac   :  { %v97_v18 = vpop.permute.xlu1 %96  ;;  %v1627_v58 = vsub.f32 %v361_v29, %v1610_v41 }
  0xad   :  { %v146_v36 = vmul.f32 %v1564_v40, %v97_v18 }
  0xae   :  { %v308_v22 = vpop.permute.xlu0 %307  ;;  %v495_v16 = vand.u32 4294901760, %v1627_v58 }
  0xaf   :  { %v332_v25 = vmul.f32 %v1571_v45, %v308_v22  ;;  %v242_v50 = vadd.f32 %v197_v1, %v146_v36  ;;  %v489_v22 = vsub.f32 %v1619_v49, %v488_v4 }
  0xb0   :  { %v202_v26 = vpop.permute.xlu1 %201 }
  0xb1   :  { %v348_v28 = vadd.f32 %v332_v25, %v248_v24  ;;  %v243_v60 = vadd.f32 %v202_v26, %v147_v48 }
  0xb2   :  { %v304_v30 = vpop.permute.xlu0 %303 }
  0xb3   :  { %v364_v32 = vmax.f32 %v348_v28, 0.0  ;;  %v331_v33 = vmul.f32 %v1571_v45, %v304_v30  ;;  %v496_v28 = vsub.f32 %v1627_v58, %v495_v16 }
  0xb4   :  { %v92_v34 = vpop.permute.xlu1 %91 }
  0xb5   :  { %v1608_v38 = vand.u32 4294901760, %v364_v32  ;;  %v347_v39 = vadd.f32 %v331_v33, %v247_v31  ;;  %v145_v17 = vmul.f32 %v1564_v40, %v92_v34 }
  0xb6   :  { %v292_v42 = vpop.permute.xlu0 %291 }
  0xb7   :  { %v1613_v44 = vsub.f32 %v364_v32, %v1608_v38  ;;  %v363_v46 = vmax.f32 %v347_v39, 0.0  ;;  %v328_v47 = vmul.f32 %v1571_v45, %v292_v42  ;;  %1151 = vmatpush3.msra.mxu0 %v1608_v38  ;;  %v241_v29 = vadd.f32 %v1586_v3, %v145_v17 }
  0xb8   :  { %1152 = vmatprep.subr.mxu0 %v1409_v7  ;;  %v490_v32 = vand.u32 4294901760, %v489_v22 }
  0xb9   :  { %v284_v51 = vpop.permute.xlu1 %283  ;;  %v1622_v52 = vand.u32 4294901760, %v363_v46  ;;  %v344_v53 = vadd.f32 %v328_v47, %v244_v43  ;;  %v474_v57 = vand.u32 4294901760, %v1613_v44  ;;  %v497_v43 = vand.u32 4294901760, %v496_v28 }
  0xba   :  { %v326_v55 = vmul.f32 %v1571_v45, %v284_v51  ;;  %v288_v61 = vpop.permute.xlu0 %287 }
  0xbb   :  { %v1630_v62 = vsub.f32 %v363_v46, %v1622_v52  ;;  %v360_v63 = vmax.f32 %v344_v53, 0.0  ;;  %v327_v1 = vmul.f32 %v1571_v45, %v288_v61  ;;  %1153 = vmatpush3.msra.mxu0 %v1622_v52  ;;  %v475_v2 = vsub.f32 %v1613_v44, %v474_v57 }
  0xbc   :  { %v342_v0 = vadd.f32 %v326_v55, %v242_v50  ;;  %1154 = vmatprep.subr.mxu0 %v1409_v7 }
  0xbd   :  { %v1639_v8 = vand.u32 4294901760, %v360_v63  ;;  %v343_v11 = vadd.f32 %v327_v1, %v243_v60  ;;  %1155 = vmatpush3.msra.mxu0 %v1604_v35  ;;  %v481_v13 = vand.u32 4294901760, %v1630_v62  ;;  %v476_v15 = vand.u32 4294901760, %v475_v2 }
  0xbe   :  { %v358_v10 = vmax.f32 %v342_v0, 0.0  ;;  %v87_v12 = vpop.permute.xlu1 %86  ;;  %1156 = vmatprep.subr.mxu0 %v1409_v7  ;;  %v276_v37 = vpop.permute.xlu0 %275 }
  0xbf   :  { %v1647_v18 = vsub.f32 %v360_v63, %v1639_v8  ;;  %v359_v20 = vmax.f32 %v343_v11, 0.0  ;;  %1157 = vmatpush3.msra.mxu0 %v1610_v41  ;;  %1186 = vmatpush3.msra.mxu1 %v476_v15  ;;  %v482_v21 = vsub.f32 %v1630_v62, %v481_v13  ;;  %v144_v39 = vmul.f32 %v1564_v40, %v87_v12 }
  0xc0   :  { %v1649_v19 = vand.u32 4294901760, %v358_v10  ;;  %1158 = vmatprep.subr.mxu0 %v1409_v7  ;;  %1187 = vmatprep.subr.mxu1 %v1409_v7  ;;  %v324_v42 = vmul.f32 %v1571_v45, %v276_v37  ;;  %v143_v12 = vmul.f32 %v1564_v40, %v1588_v5 }
  0xc1   :  { %v1662_v24 = vand.u32 4294901760, %v359_v20  ;;  %1159 = vmatpush3.msra.mxu0 %v1639_v8  ;;  %v502_v25 = vand.u32 4294901760, %v1647_v18  ;;  %v483_v27 = vand.u32 4294901760, %v482_v21 }
  0xc2   :  { %v1660_v23 = vsub.f32 %v358_v10, %v1649_v19  ;;  %1160 = vmatprep.subr.mxu0 %v1409_v7  ;;  %v272_v10 = vpop.permute.xlu0 %271 }
  0xc3   :  { %v280_v26 = vpop.permute.xlu1 %279  ;;  %v1673_v30 = vsub.f32 %v359_v20, %v1662_v24  ;;  %1161 = vmatpush3.msra.mxu0 %v1662_v24  ;;  %1188 = vmatpush3.msra.mxu1 %v483_v27  ;;  %v503_v33 = vsub.f32 %v1647_v18, %v502_v25  ;;  %v323_v17 = vmul.f32 %v1571_v45, %v272_v10 }
  0xc4   :  { %v325_v31 = vmul.f32 %v1571_v45, %v280_v26  ;;  %1162 = vmatprep.subr.mxu0 %v1409_v7  ;;  %v516_v34 = vand.u32 4294901760, %v1660_v23  ;;  %1189 = vmatprep.subr.mxu1 %v1409_v7 }
  0xc5   :  { %1163 = vmatpush3.msra.mxu0 %v1649_v19  ;;  %v509_v3 = vand.u32 4294901760, %v1673_v30  ;;  %1190 = vmatpush3.msra.mxu1 %v490_v32  ;;  %v504_v51 = vand.u32 4294901760, %v503_v33 }
  0xc6   :  { %v341_v36 = vadd.f32 %v325_v31, %v241_v29  ;;  %1164 = vmatprep.subr.mxu0 %v1409_v7  ;;  %1191 = vmatprep.subr.mxu1 %v1409_v7  ;;  %v517_v53 = vsub.f32 %v1660_v23, %v516_v34 }
  0xc7   :  { %v510_v48 = vsub.f32 %v1673_v30, %v509_v3  ;;  %1192 = vmatpush3.msra.mxu1 %v497_v43 }
  0xc8   :  { %v357_v46 = vmax.f32 %v341_v36, 0.0  ;;  %v187_v47 = vpop.permute.xlu1 %186  ;;  %1193 = vmatprep.subr.mxu1 %v1409_v7  ;;  %v518_v2 = vand.u32 4294901760, %v517_v53 }
  0xc9   :  { %v240_v50 = vadd.f32 %v187_v47, %v144_v39  ;;  %v511_v60 = vand.u32 4294901760, %v510_v48  ;;  %1194 = vmatpush3.msra.mxu1 %v504_v51 }
  0xca   :  { %v1695_v55 = vand.u32 4294901760, %v357_v46  ;;  %1195 = vmatprep.subr.mxu1 %v1409_v7 }
  0xcb   :  { %v340_v61 = vadd.f32 %v324_v42, %v240_v50  ;;  %1196 = vmatpush3.msra.mxu1 %v511_v60 }
  0xcc   :  { %v1699_v63 = vsub.f32 %v357_v46, %v1695_v55  ;;  %v77_v0 = vpop.permute.xlu1 %76  ;;  %1165 = vmatpush3.msra.mxu0 %v1695_v55  ;;  %1197 = vmatprep.subr.mxu1 %v1409_v7 }
  0xcd   :  { %v356_v1 = vmax.f32 %v340_v61, 0.0  ;;  %1166 = vmatprep.subr.mxu0 %v1409_v7  ;;  %1198 = vmatpush3.msra.mxu1 %v518_v2  ;;  %v142_v33 = vmul.f32 %v1564_v40, %v77_v0 }
  0xce   :  { %v523_v11 = vand.u32 4294901760, %v1699_v63  ;;  %1199 = vmatprep.subr.mxu1 %v1409_v7 }
  0xcf   :  { %v1708_v15 = vand.u32 4294901760, %v356_v1  ;;  %v238_v43 = vadd.f32 %v1590_v6, %v142_v33 }
  0xd0   :  { %v182_v20 = vpop.permute.xlu1 %181  ;;  %v524_v21 = vsub.f32 %v1699_v63, %v523_v11 }
  0xd1   :  { %v1716_v22 = vsub.f32 %v356_v1, %v1708_v15  ;;  %v239_v26 = vadd.f32 %v182_v20, %v143_v12  ;;  %1167 = vmatpush3.msra.mxu0 %v1708_v15 }
  0xd2   :  { %v525_v27 = vand.u32 4294901760, %v524_v21  ;;  %1168 = vmatprep.subr.mxu0 %v1409_v7 }
  0xd3   :  { %v339_v5 = vadd.f32 %v323_v17, %v239_v26  ;;  %v530_v28 = vand.u32 4294901760, %v1716_v22  ;;  %v260_v17 = vpop.permute.xlu0 %259 }
  0xd4   :  { %v72_v29 = vpop.permute.xlu1 %71  ;;  %1200 = vmatpush3.msra.mxu1 %v525_v27  ;;  %v366_v27 = vld [vmem:[%s1985_s3] sm:$0xff]  ;;  %s1411_s3 = smov [#allocation2]  }
  0xd5   :  { %v355_v31 = vmax.f32 %v339_v5, 0.0  ;;  %1201 = vmatprep.subr.mxu1 %v1409_v7  ;;  %v531_v32 = vsub.f32 %v1716_v22, %v530_v28  ;;  %v141_v61 = vmul.f32 %v1564_v40, %v72_v29  ;;  %s1038_s4 = sshll.u32 %s1411_s3, 4  ;;  %s1039_s4 = int_to_ptr.vmem [resolvable:$true] %s1038_s4 }
  0xd6   :  { %s1385_s10 = scalar_lea.vmem %s1039_s4, 128  ;;  %p1390_p1 = scmp.lt.s32.totalorder %s1039_s4, %s1039_s4 }
  0xd7   :  { %v1726_v36 = vand.u32 4294901760, %v355_v31  ;;  %v532_v37 = vand.u32 4294901760, %v531_v32  ;;  %v237_v2 = vadd.f32 %v1592_v9, %v141_v61  ;;  %v320_v9 = vmul.f32 %v1571_v45, %v260_v17  ;;  %p1386_p0 = scmp.ne.s32.totalorder %s1039_s4, %s1385_s10  ;;  %p1391_p2 = scmp.lt.s32.totalorder %s1385_s10, %s1385_s10 }
  0xd9   :  { %v1729_v39 = vsub.f32 %v355_v31, %v1726_v36  ;;  %v268_v42 = vpop.permute.xlu1 %267  ;;  %1169 = vmatpush3.msra.mxu0 %v1726_v36  ;;  %1202 = vmatpush3.msra.mxu1 %v532_v37  ;;  %v1762_v37 = vand.u32 4294901760, %v366_v27  ;;  %p1392_p3 = por %p1391_p2, %p1390_p1 }
  0xda   :  { %v322_v46 = vmul.f32 %v1571_v45, %v268_v42  ;;  %1203 = vmatprep.subr.mxu1 %v1409_v7  ;;  %1170 = vmatprep.subr.mxu0 %v1409_v7 }
  0xdb   :  { %v537_v47 = vand.u32 4294901760, %v1729_v39  ;;  %p1393_p4 = pnand %p1392_p3, %p1386_p0 }
  0xdc   :  { %v338_v48 = vadd.f32 %v322_v46, %v238_v43  ;;  %v256_v43 = vpop.permute.xlu0 %255 }
  0xdd   :  { %v538_v50 = vsub.f32 %v1729_v39, %v537_v47 }
  0xde   :  { %v354_v51 = vmax.f32 %v338_v48, 0.0  ;;  %v67_v53 = vpop.permute.xlu1 %66 }
  0xdf   :  { %v539_v60 = vand.u32 4294901760, %v538_v50  ;;  %v140_v26 = vmul.f32 %v1564_v40, %v67_v53  ;;  %v1772_v53 = vsub.f32 %v366_v27, %v1762_v37 }
  0xe0   :  { %v1741_v0 = vand.u32 4294901760, %v354_v51 }
  0xe1   :  { %1204 = vmatpush3.msra.mxu1 %v539_v60  ;;  %v139_v60 = vmul.f32 %v1564_v40, %v1597_v14  ;;  %v456_v14 = vand.u32 4294901760, %v1772_v53 }
  0xe2   :  { %v1744_v6 = vsub.f32 %v354_v51, %v1741_v0  ;;  %1171 = vmatpush3.msra.mxu0 %v1741_v0  ;;  %1205 = vmatprep.subr.mxu1 %v1409_v7 }
  0xe3   :  { %v264_v1 = vpop.permute.xlu1 %263  ;;  %1172 = vmatprep.subr.mxu0 %v1409_v7 }
  0xe4   :  { %v321_v10 = vmul.f32 %v1571_v45, %v264_v1  ;;  %v544_v12 = vand.u32 4294901760, %v1744_v6 }
  0xe6   :  { %v337_v20 = vadd.f32 %v321_v10, %v237_v2  ;;  %v545_v21 = vsub.f32 %v1744_v6, %v544_v12  ;;  %v319_v10 = vmul.f32 %v1571_v45, %v256_v43 }
  0xe8   :  { %v353_v5 = vmax.f32 %v337_v20, 0.0  ;;  %v167_v29 = vpop.permute.xlu1 %166  ;;  %v546_v31 = vand.u32 4294901760, %v545_v21  ;;  %v252_v21 = vpop.permute.xlu0 %251 }
  0xe9   :  { %v236_v32 = vadd.f32 %v167_v29, %v140_v26 }
  0xea   :  { %v1760_v33 = vand.u32 4294901760, %v353_v5  ;;  %1206 = vmatpush3.msra.mxu1 %v546_v31 }
  0xeb   :  { %v336_v42 = vadd.f32 %v320_v9, %v236_v32  ;;  %1207 = vmatprep.subr.mxu1 %v1409_v7  ;;  %v318_v9 = vmul.f32 %v1571_v45, %v252_v21 }
  0xec   :  { %v1766_v46 = vsub.f32 %v353_v5, %v1760_v33  ;;  %v57_v48 = vpop.permute.xlu1 %56  ;;  %1173 = vmatpush3.msra.mxu0 %v1760_v33 }
  0xed   :  { %v352_v50 = vmax.f32 %v336_v42, 0.0  ;;  %1174 = vmatprep.subr.mxu0 %v1409_v7  ;;  %v138_v27 = vmul.f32 %v1564_v40, %v57_v48 }
  0xee   :  { %v551_v51 = vand.u32 4294901760, %v1766_v46 }
  0xef   :  { %v1776_v61 = vand.u32 4294901760, %v352_v50 }
  0xf0   :  { %v162_v1 = vpop.permute.xlu1 %161  ;;  %v552_v2 = vsub.f32 %v1766_v46, %v551_v51 }
  0xf1   :  { %v1783_v17 = vsub.f32 %v352_v50, %v1776_v61  ;;  %v235_v20 = vadd.f32 %v162_v1, %v139_v60  ;;  %1175 = vmatpush3.msra.mxu0 %v1776_v61  ;;  %v457_v50 = vsub.f32 %v1772_v53, %v456_v14 }
  0xf2   :  { %v553_v26 = vand.u32 4294901760, %v552_v2  ;;  %1176 = vmatprep.subr.mxu0 %v1409_v7 }
  0xf3   :  { %v335_v5 = vadd.f32 %v319_v10, %v235_v20  ;;  %v558_v29 = vand.u32 4294901760, %v1783_v17  ;;  %v458_v2 = vand.u32 4294901760, %v457_v50 }
  0xf4   :  { %v157_v31 = vpop.permute.xlu1 %156  ;;  %1208 = vmatpush3.msra.mxu1 %v553_v26 }
  0xf5   :  { %v351_v32 = vmax.f32 %v335_v5, 0.0  ;;  %v234_v42 = vadd.f32 %v157_v31, %v138_v27  ;;  %1209 = vmatprep.subr.mxu1 %v1409_v7  ;;  %v559_v43 = vsub.f32 %v1783_v17, %v558_v29 }
  0xf7   :  { %v1798_v40 = vand.u32 4294901760, %v351_v32  ;;  %v334_v48 = vadd.f32 %v318_v9, %v234_v42  ;;  %v560_v60 = vand.u32 4294901760, %v559_v43 }
  0xf9   :  { %v1801_v1 = vsub.f32 %v351_v32, %v1798_v40  ;;  %v350_v45 = vmax.f32 %v334_v48, 0.0  ;;  %1177 = vmatpush3.msra.mxu0 %v1798_v40  ;;  %1210 = vmatpush3.msra.mxu1 %v560_v60 }
  0xfa   :  { %1178 = vmatprep.subr.mxu0 %v1409_v7  ;;  %1211 = vmatprep.subr.mxu1 %v1409_v7 }
  0xfb   :  { %v1806_v10 = vand.u32 4294901760, %v350_v45  ;;  %v565_v20 = vand.u32 4294901760, %v1801_v1 }
  0xfd   :  { %v1810_v21 = vsub.f32 %v350_v45, %v1806_v10  ;;  %1179 = vmatpush3.msra.mxu0 %v1806_v10  ;;  %v566_v26 = vsub.f32 %v1801_v1, %v565_v20 }
  0xfe   :  { %1181 = vmatmul.mubr.f32.vlgmr.msra.gmra.mxu0 %v458_v2  ;;  %1218 = vmatprep.subr.mxu0 %v1409_v7 }
  0xff   :  { %1219 = vmatpush3.msra.mxu0 %v1577_v56  ;;  %v567_v27 = vand.u32 4294901760, %v566_v26  ;;  %v572_v5 = vand.u32 4294901760, %v1810_v21  ;;  %1250 = vmatprep.mubr.msk.f32.mxu0 %vm1410_vm0, %v1409_v7 }
 0x100   :  { %1220 = vmatprep.subr.mxu0 %v1409_v7 }
 0x101   :  { %1212 = vmatpush3.msra.mxu1 %v567_v27  ;;  %1221 = vmatpush3.msra.mxu0 %v1613_v44  ;;  %v573_v31 = vsub.f32 %v1810_v21, %v572_v5 }
 0x102   :  { %1222 = vmatprep.subr.mxu0 %v1409_v7  ;;  %1213 = vmatprep.subr.mxu1 %v1409_v7 }
 0x103   :  { %1223 = vmatpush3.msra.mxu0 %v1630_v62  ;;  %v574_v9 = vand.u32 4294901760, %v573_v31 }
 0x104   :  { %1224 = vmatprep.subr.mxu0 %v1409_v7 }
 0x105   :  { %1214 = vmatpush3.msra.mxu1 %v574_v9  ;;  %1225 = vmatpush3.msra.mxu0 %v1619_v49 }
 0x106   :  { %1216 = vmatmul.mubr.f32.vlgmr.msra.gmra.mxu1 %v1762_v37  ;;  %1226 = vmatprep.subr.mxu0 %v1409_v7 }
 0x107   :  { %1253 = vmatprep.subr.mxu1 %v1409_v7  ;;  %1227 = vmatpush3.msra.mxu0 %v1627_v58 }
 0x108   :  { %1254 = vmatpush3.msra.mxu1 %v1574_v54  ;;  %1228 = vmatprep.subr.mxu0 %v1409_v7 }
 0x109   :  { %1255 = vmatprep.subr.mxu1 %v1409_v7  ;;  %1229 = vmatpush3.msra.mxu0 %v1647_v18 }
 0x10a   :  { %1256 = vmatpush3.msra.mxu1 %v1608_v38  ;;  %1230 = vmatprep.subr.mxu0 %v1409_v7 }
 0x10b   :  { %1257 = vmatprep.subr.mxu1 %v1409_v7  ;;  %1231 = vmatpush3.msra.mxu0 %v1673_v30 }
 0x10c   :  { %1258 = vmatpush3.msra.mxu1 %v1622_v52  ;;  %1232 = vmatprep.subr.mxu0 %v1409_v7 }
 0x10d   :  { %1259 = vmatprep.subr.mxu1 %v1409_v7  ;;  %1233 = vmatpush3.msra.mxu0 %v1660_v23 }
 0x10e   :  { %1260 = vmatpush3.msra.mxu1 %v1604_v35  ;;  %1234 = vmatprep.subr.mxu0 %v1409_v7 }
 0x10f   :  { %1261 = vmatprep.subr.mxu1 %v1409_v7  ;;  %1235 = vmatpush3.msra.mxu0 %v1699_v63 }
 0x110   :  { %1262 = vmatpush3.msra.mxu1 %v1610_v41  ;;  %1236 = vmatprep.subr.mxu0 %v1409_v7 }
 0x111   :  { %1263 = vmatprep.subr.mxu1 %v1409_v7  ;;  %1237 = vmatpush3.msra.mxu0 %v1716_v22 }
 0x112   :  { %1264 = vmatpush3.msra.mxu1 %v1639_v8  ;;  %1238 = vmatprep.subr.mxu0 %v1409_v7 }
 0x113   :  { %1265 = vmatprep.subr.mxu1 %v1409_v7  ;;  %1239 = vmatpush3.msra.mxu0 %v1729_v39 }
 0x114   :  { %1266 = vmatpush3.msra.mxu1 %v1662_v24  ;;  %1240 = vmatprep.subr.mxu0 %v1409_v7 }
 0x115   :  { %1267 = vmatprep.subr.mxu1 %v1409_v7  ;;  %1241 = vmatpush3.msra.mxu0 %v1744_v6 }
 0x116   :  { %1268 = vmatpush3.msra.mxu1 %v1649_v19  ;;  %1242 = vmatprep.subr.mxu0 %v1409_v7 }
 0x117   :  { %1269 = vmatprep.subr.mxu1 %v1409_v7  ;;  %1243 = vmatpush3.msra.mxu0 %v1766_v46 }
 0x118   :  { %1270 = vmatpush3.msra.mxu1 %v1695_v55  ;;  %1244 = vmatprep.subr.mxu0 %v1409_v7 }
 0x119   :  { %1271 = vmatprep.subr.mxu1 %v1409_v7  ;;  %1245 = vmatpush3.msra.mxu0 %v1783_v17 }
 0x11a   :  { %1272 = vmatpush3.msra.mxu1 %v1708_v15  ;;  %1246 = vmatprep.subr.mxu0 %v1409_v7 }
 0x11b   :  { %1273 = vmatprep.subr.mxu1 %v1409_v7  ;;  %1247 = vmatpush3.msra.mxu0 %v1801_v1 }
 0x11c   :  { %1274 = vmatpush3.msra.mxu1 %v1726_v36  ;;  %1248 = vmatprep.subr.mxu0 %v1409_v7 }
 0x11d   :  { %1275 = vmatprep.subr.mxu1 %v1409_v7  ;;  %1249 = vmatpush3.msra.mxu0 %v1810_v21 }
 0x11e   :  { %1276 = vmatpush3.msra.mxu1 %v1741_v0  ;;  %1251 = vmatmul.mubr.f32.vlgmr.msra.gmra.mxu0 %v1772_v53 }
 0x11f   :  { %1277 = vmatprep.subr.mxu1 %v1409_v7  ;;  %1288 = vmatprep.subr.mxu0 %v1409_v7 }
 0x120   :  { %1278 = vmatpush3.msra.mxu1 %v1760_v33  ;;  %1289 = vmatpush3.msra.mxu0 %v467_v59 }
 0x121   :  { %1279 = vmatprep.subr.mxu1 %v1409_v7  ;;  %1290 = vmatprep.subr.mxu0 %v1409_v7 }
 0x122   :  { %1280 = vmatpush3.msra.mxu1 %v1776_v61  ;;  %1291 = vmatpush3.msra.mxu0 %v474_v57 }
 0x123   :  { %1281 = vmatprep.subr.mxu1 %v1409_v7  ;;  %1292 = vmatprep.subr.mxu0 %v1409_v7 }
 0x124   :  { %1282 = vmatpush3.msra.mxu1 %v1798_v40  ;;  %1293 = vmatpush3.msra.mxu0 %v481_v13 }
 0x125   :  { %1283 = vmatprep.subr.mxu1 %v1409_v7  ;;  %1294 = vmatprep.subr.mxu0 %v1409_v7 }
 0x126   :  { %1284 = vmatpush3.msra.mxu1 %v1806_v10  ;;  %1285 = vmatprep.mubr.msk.f32.mxu1 %vm1410_vm0, %v1409_v7 }
 0x127   :  { %1295 = vmatpush3.msra.mxu0 %v488_v4  ;;  %1286 = vmatmul.mubr.f32.vlgmr.msra.gmra.mxu1 %v456_v14 }
 0x128   :  { %1296 = vmatprep.subr.mxu0 %v1409_v7  ;;  %1323 = vmatprep.subr.mxu1 %v1409_v7 }
 0x129   :  { %1297 = vmatpush3.msra.mxu0 %v495_v16  ;;  %1324 = vmatpush3.msra.mxu1 %v1574_v54 }
 0x12a   :  { %1298 = vmatprep.subr.mxu0 %v1409_v7  ;;  %1325 = vmatprep.subr.mxu1 %v1409_v7 }
 0x12b   :  { %1299 = vmatpush3.msra.mxu0 %v502_v25  ;;  %1326 = vmatpush3.msra.mxu1 %v1608_v38 }
 0x12c   :  { %1300 = vmatprep.subr.mxu0 %v1409_v7  ;;  %1327 = vmatprep.subr.mxu1 %v1409_v7 }
 0x12d   :  { %1301 = vmatpush3.msra.mxu0 %v509_v3  ;;  %1328 = vmatpush3.msra.mxu1 %v1622_v52  ;;  %v371_v52 = vpop.permute.xlu1 %370 }
 0x12e   :  { %1302 = vmatprep.subr.mxu0 %v1409_v7  ;;  %1329 = vmatprep.subr.mxu1 %v1409_v7 }
 0x12f   :  { %1303 = vmatpush3.msra.mxu0 %v516_v34  ;;  %1330 = vmatpush3.msra.mxu1 %v1604_v35 }
 0x130   :  { %1304 = vmatprep.subr.mxu0 %v1409_v7  ;;  %1331 = vmatprep.subr.mxu1 %v1409_v7 }
 0x131   :  { %1305 = vmatpush3.msra.mxu0 %v523_v11  ;;  %1332 = vmatpush3.msra.mxu1 %v1610_v41 }
 0x132   :  { %1306 = vmatprep.subr.mxu0 %v1409_v7  ;;  %1333 = vmatprep.subr.mxu1 %v1409_v7 }
 0x133   :  { %1307 = vmatpush3.msra.mxu0 %v530_v28  ;;  %1334 = vmatpush3.msra.mxu1 %v1639_v8 }
 0x134   :  { %1308 = vmatprep.subr.mxu0 %v1409_v7  ;;  %1335 = vmatprep.subr.mxu1 %v1409_v7 }
 0x135   :  { %1309 = vmatpush3.msra.mxu0 %v537_v47  ;;  %1336 = vmatpush3.msra.mxu1 %v1662_v24 }
 0x136   :  { %1310 = vmatprep.subr.mxu0 %v1409_v7  ;;  %1337 = vmatprep.subr.mxu1 %v1409_v7 }
 0x137   :  { %1311 = vmatpush3.msra.mxu0 %v544_v12  ;;  %1338 = vmatpush3.msra.mxu1 %v1649_v19 }
 0x138   :  { %1312 = vmatprep.subr.mxu0 %v1409_v7  ;;  %1339 = vmatprep.subr.mxu1 %v1409_v7 }
 0x139   :  { %1313 = vmatpush3.msra.mxu0 %v551_v51  ;;  %1340 = vmatpush3.msra.mxu1 %v1695_v55 }
 0x13a   :  { %1314 = vmatprep.subr.mxu0 %v1409_v7  ;;  %1341 = vmatprep.subr.mxu1 %v1409_v7 }
 0x13b   :  { %1315 = vmatpush3.msra.mxu0 %v558_v29  ;;  %1342 = vmatpush3.msra.mxu1 %v1708_v15 }
 0x13c   :  { %1316 = vmatprep.subr.mxu0 %v1409_v7  ;;  %1343 = vmatprep.subr.mxu1 %v1409_v7 }
 0x13d   :  { %1317 = vmatpush3.msra.mxu0 %v565_v20  ;;  %1344 = vmatpush3.msra.mxu1 %v1726_v36 }
 0x13e   :  { %1318 = vmatprep.subr.mxu0 %v1409_v7  ;;  %1345 = vmatprep.subr.mxu1 %v1409_v7 }
 0x13f   :  { %1319 = vmatpush3.msra.mxu0 %v572_v5  ;;  %1320 = vmatprep.mubr.msk.f32.mxu0 %vm1410_vm0, %v1409_v7 }
 0x140   :  { %1346 = vmatpush3.msra.mxu1 %v1741_v0  ;;  %1321 = vmatmul.mubr.f32.vlgmr.msra.gmra.mxu0 %v1762_v37 }
 0x141   :  { %1347 = vmatprep.subr.mxu1 %v1409_v7  ;;  %1355 = vmatprep.mubr.msk.f32.mxu1 %vm1410_vm0, %v1409_v7 }
 0x142   :  { %1348 = vmatpush3.msra.mxu1 %v1760_v33 }
 0x143   :  { %1349 = vmatprep.subr.mxu1 %v1409_v7 }
 0x144   :  { %1350 = vmatpush3.msra.mxu1 %v1776_v61 }
 0x145   :  { %1351 = vmatprep.subr.mxu1 %v1409_v7 }
 0x146   :  { %1352 = vmatpush3.msra.mxu1 %v1798_v40 }
 0x147   :  { %1353 = vmatprep.subr.mxu1 %v1409_v7 }
 0x148   :  { %1354 = vmatpush3.msra.mxu1 %v1806_v10 }
 0x149   :  { %1356 = vmatmul.mubr.f32.vlgmr.msra.gmra.mxu1 %v1762_v37 }
 0x1be   :  { %v460_v54 = vpop.f32.mrf.mxu0 }
 0x1bf   :  { %v461_v57 = vadd.f32 %v460_v54, %v371_v52 }
 0x1c0   :  { %v1182_v56 = vpop.f32.mrf.mxu0 }
 0x1c6   :  { %v611_v59 = vpop.f32.mrf.mxu1 }
 0x1c7   :  { %v612_v62 = vadd.f32 %v611_v59, %v461_v57 }
 0x1c8   :  { %v1217_v35 = vpop.f32.mrf.mxu1 }
 0x1de   :  { %v715_v38 = vpop.f32.mrf.mxu0 }
 0x1df   :  { %v716_v8 = vadd.f32 %v715_v38, %v612_v62 }
 0x1e0   :  { %v1252_v41 = vpop.f32.mrf.mxu0 }
 0x1e7   :  { %v804_v44 = vpop.f32.mrf.mxu1 }
 0x1e8   :  { %v805_v13 = vadd.f32 %v804_v44, %v716_v8 }
 0x1e9   :  { %v1287_v49 = vpop.f32.mrf.mxu1 }
 0x200   :  { %v923_v58 = vpop.f32.mrf.mxu0 }
 0x201   :  { %v924_v7 = vadd.f32 %v923_v58, %v805_v13 }
 0x202   :  { %v1322_v4 = vpop.f32.mrf.mxu0 }
 0x209   :  { %v1010_v16 = vpop.f32.mrf.mxu1 }
 0x20a   :  { %v1011_v18 = vadd.f32 %v1010_v16, %v924_v7 }
 0x20b   :  { %v1357_v19 = vpop.f32.mrf.mxu1 }
 0x20c   :  { %v1014_v23 = vrot.slane %v1011_v18, 4 }
 0x20e   :  { %v1015_v24 = vmax.f32 %v1011_v18, %v1014_v23 }
 0x210   :  { %v1016_v25 = vrot.slane %v1015_v24, 2 }
 0x212   :  { %v1017_v30 = vmax.f32 %v1015_v24, %v1016_v25 }
 0x214   :  { %v1018_v34 = vrot.slane %v1017_v30, 1 }
 0x216   :  { %v1019_v3 = vmax.f32 %v1017_v30, %v1018_v34 }
 0x218   :  { %v1020_v55 = vsub.f32 %v1011_v18, %v1019_v3 }
 0x21a   :  { %v1021_v63 = vmul.f32 1.442695, %v1020_v55 }
 0x21c   :  { %1381 = vpow2.f32 %v1021_v63 }
 0x229   :  { %v1382_v11 = vpop.eup %1381 }
 0x22a   :  { %v1023_v15 = vrot.slane %v1382_v11, 4 }
 0x22c   :  { %v1024_v22 = vadd.f32 %v1382_v11, %v1023_v15 }
 0x22e   :  { %v1025_v28 = vrot.slane %v1024_v22, 2 }
 0x230   :  { %v1026_v36 = vadd.f32 %v1025_v28, %v1024_v22 }
 0x232   :  { %v1027_v39 = vrot.slane %v1026_v36, 1 }
 0x234   :  { %v1028_v47 = vadd.f32 %v1027_v39, %v1026_v36 }
 0x236   :  { %1383 = vrcp.f32 %v1028_v47 }
 0x243   :  { %v1384_v0 = vpop.eup %1383 }
 0x244   :  { %v1030_v6 = vmul.f32 %v1384_v0, %v1382_v11 }
 0x246   :  { %1031 = vst [vmem:[#allocation2] sm:$0xff] %v1030_v6 }
 0x247   :  { %1396 = shalt.err (!%p1393_p4)
}
 0x248   :  { %1041 = dma.vmem_to_hbm [thread:$0]  %s1039_s4, 128, %s1987_s5, [#allocation3]  }
 0x249   :  { %1405 = dma.done.wait [#allocation3], 128  }
 0x24a   :  { %1406 = vsyncadd [#allocation3], 4294967168 }
 0x24b   :  { %1045 = vsyncpa [#allocation3], 1 }

</bundles_post_ra>
